<compile_context>
chip_gen: v5e
topology: v5e:2x2
jax: 0.10.0
libtpu: 0.0.40
codegen_flags: <defaults>
</compile_context>

<pallas_src>
import jax
import jax.numpy as jnp
from jax.experimental import pallas as pl
from jax.experimental.pallas import tpu as pltpu


def _round_up(v, m):
    return ((v + m - 1) // m) * m


def _vmem_budget_bytes():
    """Generation-aware VMEM limit: ~75% of physical VMEM, conservative fallback."""
    cap = 64 * 1024 * 1024  # conservative default == v7x physical VMEM
    try:
        info = pltpu.get_tpu_info()
        cap = int(getattr(info, "vmem_capacity_bytes", cap) or cap)
    except Exception:
        pass
    return max(32 * 1024 * 1024, (cap * 3) // 4)


def _ffn_kernel(x_ref, w1_ref, b1_ref, w2_ref, b2_ref, o_ref, acc_ref):
    # x_ref : (tile_n, d_in_p)
    # w1_ref: (d_in_p, tile_h)   -- pre-transposed chunk (MXU-native contraction)
    # b1_ref: (1, tile_h)
    # w2_ref: (tile_h, d_in_p)   -- pre-transposed chunk
    # b2_ref: (1, d_in_p)
    # acc_ref: (tile_n, d_in_p) f32 accumulator across the hidden-dim grid axis
    h_idx = pl.program_id(1)

    @pl.when(h_idx == 0)
    def _():
        acc_ref[...] = jnp.zeros_like(acc_ref)

    h = jnp.dot(x_ref[...], w1_ref[...], preferred_element_type=jnp.float32)
    h = jnp.maximum(h + b1_ref[...], 0.0)                  # bias + ReLU (VPU)
    acc_ref[...] += jnp.dot(h.astype(w2_ref.dtype), w2_ref[...],
                            preferred_element_type=jnp.float32)

    @pl.when(h_idx == pl.num_programs(1) - 1)
    def _():
        o_ref[...] = (acc_ref[...] + b2_ref[...]).astype(o_ref.dtype)


def positionwise_feed_forward(x, w1, b1, w2, b2, *, tile_n_max=None, tile_h_max=512):
    """Matches PyTorch: w_2(relu(w_1(x))); dropout as identity (eval mode).

    x : (..., d_in)
    w1: (d_hid, d_in), b1: (d_hid,)    -- PyTorch nn.Linear layouts
    w2: (d_in, d_hid), b2: (d_in,)
    """
    orig_shape = x.shape
    d_in = orig_shape[-1]
    d_hid = w1.shape[0]
    x2d = x.reshape(-1, d_in)
    n_rows = x2d.shape[0]
    n = max(n_rows, 1)

    itemsize = jnp.dtype(x.dtype).itemsize
    w_itemsize = jnp.dtype(w1.dtype).itemsize
    sublane = {4: 8, 2: 16, 1: 32}.get(itemsize, 8)

    vmem_limit = _vmem_budget_bytes()
    budget = (vmem_limit * 9) // 10       # headroom for compiler scratch
    if tile_n_max is None:
        # Larger row tiles on 128 MiB parts (v5e/v6e), smaller cap on v7x.
        tile_n_max = 1024 if vmem_limit >= 80 * 1024 * 1024 else 512

    # Lane alignment (128): unmasked lane-dense stores + full MXU rows.
    # TODO(synk): round to 256 on v6e/v7x (2x256^2 MXU) when padding is cheap.
    d_in_p = _round_up(d_in, 128)
    d_hid_p = _round_up(d_hid, 128)

    # Hidden-dim tile: cap so (worst-case double-buffered) weight chunks stay
    # well under the budget; VMEM footprint is then independent of d_ff.
    tile_h = min(d_hid_p, _round_up(tile_h_max, 128))
    while tile_h > 128 and 4 * d_in_p * tile_h * w_itemsize > budget // 2:
        tile_h = _round_up(tile_h // 2, 128)
    d_hid_p = _round_up(d_hid_p, tile_h)
    grid_h = d_hid_p // tile_h
    n_wbuf = 1 if grid_h == 1 else 2      # single-buffer fully-resident weights

    def fits(tile_n):
        acts = 4 * tile_n * d_in_p * itemsize            # x + out, double-buffered
        wts = 2 * n_wbuf * d_in_p * tile_h * w_itemsize  # w1 + w2 chunks
        acc = tile_n * d_in_p * 4                        # f32 accumulator scratch
        hid = tile_n * tile_h * 4                        # live f32 hidden tile
        return acts + wts + acc + hid <= budget

    n_aligned = _round_up(n, sublane)
    tile_n = min(_round_up(tile_n_max, sublane), n_aligned)
    while tile_n > sublane and not fits(tile_n):
        tile_n = _round_up(tile_n // 2, sublane)
    # Megacore: guarantee >= 2 row tiles when there is enough work so the
    # "parallel" row axis can shard across both TensorCores on v7x.
    if n_aligned <= tile_n and n_aligned > sublane:
        tile_n = _round_up((n_aligned + 1) // 2, sublane)
    n_pad = _round_up(n_aligned, tile_n)
    grid_n = n_pad // tile_n

    # Pre-transpose to MXU-native orientation and zero-pad to the tile grid.
    # Padded hidden units see zero weights/bias -> relu(0)=0 -> contribute 0.
    # TODO(synk): store the parameters pre-padded/pre-transposed at model setup
    # so these become no-ops instead of per-call HBM copies.
    w1t = jnp.pad(w1.T, ((0, d_in_p - d_in), (0, d_hid_p - d_hid)))
    w2t = jnp.pad(w2.T, ((0, d_hid_p - d_hid), (0, d_in_p - d_in)))
    b1_p = jnp.pad(b1, (0, d_hid_p - d_hid)).reshape(1, d_hid_p)
    b2_p = jnp.pad(b2, (0, d_in_p - d_in)).reshape(1, d_in_p)
    x_p = jnp.pad(x2d, ((0, n_pad - n_rows), (0, d_in_p - d_in)))

    const = grid_h == 1  # weight/bias blocks never change -> single-buffer

    def spec(shape, index_map, constant):
        if constant:
            return pl.BlockSpec(shape, index_map, pipeline_mode=pl.Buffered(1))
        return pl.BlockSpec(shape, index_map)

    cost = pl.CostEstimate(
        flops=4 * n_pad * d_in_p * d_hid_p,   # two matmuls, 2 flops/MAC
        transcendentals=0,
        bytes_accessed=(x_p.size * itemsize
                        + (1 if const else grid_n) * (w1t.size + w2t.size) * w_itemsize
                        + (b1_p.size + b2_p.size) * w_itemsize
                        + n_pad * d_in_p * itemsize),
    )

    out2d = pl.pallas_call(
        _ffn_kernel,
        out_shape=jax.ShapeDtypeStruct((n_pad, d_in_p), x.dtype),
        grid_spec=pltpu.PrefetchScalarGridSpec(
            num_scalar_prefetch=0,
            grid=(grid_n, grid_h),
            in_specs=[
                # Row-tiled activations: pipelined (double-buffered) by Pallas.
                pl.BlockSpec((tile_n, d_in_p), lambda i, h: (i, 0)),
                # Weight / bias chunks along the hidden dim (pre-transposed).
                spec((d_in_p, tile_h), lambda i, h: (0, h), const),
                spec((1, tile_h), lambda i, h: (0, h), const),
                spec((tile_h, d_in_p), lambda i, h: (h, 0), const),
                # Output bias: always constant -> always single-buffered.
                spec((1, d_in_p), lambda i, h: (0, 0), True),
            ],
            out_specs=pl.BlockSpec((tile_n, d_in_p), lambda i, h: (i, 0)),
            scratch_shapes=[pltpu.VMEM((tile_n, d_in_p), jnp.float32)],
        ),
        compiler_params=pltpu.CompilerParams(
            dimension_semantics=("parallel", "arbitrary"),
            vmem_limit_bytes=vmem_limit,
        ),
        cost_estimate=cost,
    )(x_p, w1t, b1_p, w2t, b2_p)

    return out2d[:n_rows, :d_in].reshape(orig_shape)


def _reference(x, w1, b1, w2, b2):
    h = jnp.maximum(jnp.einsum("...i,hi->...h", x, w1) + b1, 0.0)
    return jnp.einsum("...h,ih->...i", h, w2) + b2


if __name__ == "__main__":
    key = jax.random.PRNGKey(0)

    def make_params(k, d_in, d_hid):
        k_w1, k_b1, k_w2, k_b2 = jax.random.split(k, 4)
        lim1 = 1.0 / (d_in ** 0.5)
        lim2 = 1.0 / (d_hid ** 0.5)
        w1 = jax.random.uniform(k_w1, (d_hid, d_in), minval=-lim1, maxval=lim1)
        b1 = jax.random.uniform(k_b1, (d_hid,), minval=-lim1, maxval=lim1)
        w2 = jax.random.uniform(k_w2, (d_in, d_hid), minval=-lim2, maxval=lim2)
        b2 = jax.random.uniform(k_b2, (d_in,), minval=-lim2, maxval=lim2)
        return w1, b1, w2, b2

    k_x, k_p, k_x2, k_p2 = jax.random.split(key, 4)

    # Case 1: hidden dim fits in one block (grid_h == 1) -> resident,
    # single-buffered weights; two row tiles (megacore-friendly grid).
    batch, seq, d_in, d_hid = 2, 8, 32, 64
    x = jax.random.normal(k_x, (batch, seq, d_in), dtype=jnp.float32)
    w1, b1, w2, b2 = make_params(k_p, d_in, d_hid)
    out = positionwise_feed_forward(x, w1, b1, w2, b2)
    jax.block_until_ready(out)
    ref = _reference(x, w1, b1, w2, b2)
    assert out.shape == x.shape
    assert jnp.allclose(out, ref, atol=1e-4, rtol=1e-4), "case-1 mismatch vs reference"

    # Case 2: hidden dim tiled across the reduction grid axis (grid_h == 2)
    # to exercise the f32 accumulator init/finalize path.
    d_in2, d_hid2 = 32, 256
    x2 = jax.random.normal(k_x2, (batch, seq, d_in2), dtype=jnp.float32)
    w1b, b1b, w2b, b2b = make_params(k_p2, d_in2, d_hid2)
    out2 = positionwise_feed_forward(x2, w1b, b1b, w2b, b2b, tile_h_max=128)
    jax.block_until_ready(out2)
    ref2 = _reference(x2, w1b, b1b, w2b, b2b)
    assert jnp.allclose(out2, ref2, atol=1e-4, rtol=1e-4), "case-2 mismatch vs reference"

    print("KERNEL_OK")
</pallas_src>

<mosaic_0001>
module attributes {stable_mosaic.version = 11 : i64} {
  func.func @_ffn_kernel(%arg0: i32, %arg1: i32, %arg2: memref<8x128xf32, #tpu.memory_space<vmem>>, %arg3: memref<128x128xf32, #tpu.memory_space<vmem>>, %arg4: memref<1x128xf32, #tpu.memory_space<vmem>>, %arg5: memref<128x128xf32, #tpu.memory_space<vmem>>, %arg6: memref<1x128xf32, #tpu.memory_space<vmem>>, %arg7: memref<8x128xf32, #tpu.memory_space<vmem>>, %arg8: memref<8x128xf32, #tpu.memory_space<vmem>>) attributes {dimension_semantics = [#tpu.dimension_semantics<parallel>, #tpu.dimension_semantics<arbitrary>], iteration_bounds = array<i64: 2, 1>, scalar_prefetch = 0 : i64, scratch_operands = 1 : i64, tpu.core_type = #tpu.core_type<tc>, window_params = [{transform_indices = @transform_0, window_bounds = array<i64: 8, 128>}, {pipeline_mode = #tpu.pipeline_mode<synchronous>, transform_indices = @transform_1, window_bounds = array<i64: 128, 128>}, {pipeline_mode = #tpu.pipeline_mode<synchronous>, transform_indices = @transform_2, window_bounds = array<i64: 1, 128>}, {pipeline_mode = #tpu.pipeline_mode<synchronous>, transform_indices = @transform_3, window_bounds = array<i64: 128, 128>}, {pipeline_mode = #tpu.pipeline_mode<synchronous>, transform_indices = @transform_4, window_bounds = array<i64: 1, 128>}, {transform_indices = @transform_5, window_bounds = array<i64: 8, 128>}]} {
    %c0_i32 = arith.constant 0 : i32
    %0 = arith.cmpi eq, %arg1, %c0_i32 : i32
    %1 = arith.extui %0 : i1 to i32
    %c0_i32_0 = arith.constant 0 : i32
    %2 = arith.cmpi ne, %1, %c0_i32_0 : i32
    scf.if %2 {
      %cst_16 = arith.constant 0.000000e+00 : f32
      %19 = vector.broadcast %cst_16 : f32 to vector<8x128xf32>
      %c0_17 = arith.constant 0 : index
      %c0_18 = arith.constant 0 : index
      %20 = vector.load %arg8[%c0_17, %c0_18] : memref<8x128xf32, #tpu.memory_space<vmem>>, vector<8x128xf32>
      tpu.vector_store %arg8[%c0_17, %c0_18], %19 {strides = array<i32>} : memref<8x128xf32, #tpu.memory_space<vmem>>, vector<8x128xf32>,
    } else {
    }
    %c0 = arith.constant 0 : index
    %c0_1 = arith.constant 0 : index
    %3 = vector.load %arg2[%c0, %c0_1] : memref<8x128xf32, #tpu.memory_space<vmem>>, vector<8x128xf32>
    %c0_2 = arith.constant 0 : index
    %c0_3 = arith.constant 0 : index
    %4 = vector.load %arg3[%c0_2, %c0_3] : memref<128x128xf32, #tpu.memory_space<vmem>>, vector<128x128xf32>
    %cst = arith.constant dense<0.000000e+00> : vector<8x128xf32>
    %5 = tpu.matmul %3, %4, %cst {dimension_numbers = #tpu.dot_dimension_numbers<[1], [0], [0], [1], [0, 0, 1, 1], [], []>} : vector<8x128xf32>, vector<128x128xf32>, vector<8x128xf32> -> vector<8x128xf32>
    %c0_4 = arith.constant 0 : index
    %c0_5 = arith.constant 0 : index
    %6 = vector.load %arg4[%c0_4, %c0_5] : memref<1x128xf32, #tpu.memory_space<vmem>>, vector<1x128xf32>
    %7 = vector.broadcast %6 : vector<1x128xf32> to vector<8x128xf32>
    %8 = arith.addf %5, %7 : vector<8x128xf32>
    %cst_6 = arith.constant 0.000000e+00 : f32
    %9 = vector.broadcast %cst_6 : f32 to vector<8x128xf32>
    %10 = arith.maximumf %8, %9 : vector<8x128xf32>
    %c0_7 = arith.constant 0 : index
    %c0_8 = arith.constant 0 : index
    %11 = vector.load %arg8[%c0_7, %c0_8] : memref<8x128xf32, #tpu.memory_space<vmem>>, vector<8x128xf32>
    %c0_9 = arith.constant 0 : index
    %c0_10 = arith.constant 0 : index
    %12 = vector.load %arg5[%c0_9, %c0_10] : memref<128x128xf32, #tpu.memory_space<vmem>>, vector<128x128xf32>
    %cst_11 = arith.constant dense<0.000000e+00> : vector<8x128xf32>
    %13 = tpu.matmul %10, %12, %cst_11 {dimension_numbers = #tpu.dot_dimension_numbers<[1], [0], [0], [1], [0, 0, 1, 1], [], []>} : vector<8x128xf32>, vector<128x128xf32>, vector<8x128xf32> -> vector<8x128xf32>
    %14 = arith.addf %11, %13 : vector<8x128xf32>
    %c0_12 = arith.constant 0 : index
    %c0_13 = arith.constant 0 : index
    %15 = vector.load %arg8[%c0_12, %c0_13] : memref<8x128xf32, #tpu.memory_space<vmem>>, vector<8x128xf32>
    tpu.vector_store %arg8[%c0_12, %c0_13], %14 {strides = array<i32>} : memref<8x128xf32, #tpu.memory_space<vmem>>, vector<8x128xf32>,
    %c0_i32_14 = arith.constant 0 : i32
    %16 = arith.cmpi eq, %arg1, %c0_i32_14 : i32
    %17 = arith.extui %16 : i1 to i32
    %c0_i32_15 = arith.constant 0 : i32
    %18 = arith.cmpi ne, %17, %c0_i32_15 : i32
    scf.if %18 {
      %c0_16 = arith.constant 0 : index
      %c0_17 = arith.constant 0 : index
      %19 = vector.load %arg8[%c0_16, %c0_17] : memref<8x128xf32, #tpu.memory_space<vmem>>, vector<8x128xf32>
      %c0_18 = arith.constant 0 : index
      %c0_19 = arith.constant 0 : index
      %20 = vector.load %arg6[%c0_18, %c0_19] : memref<1x128xf32, #tpu.memory_space<vmem>>, vector<1x128xf32>
      %21 = vector.broadcast %20 : vector<1x128xf32> to vector<8x128xf32>
      %22 = arith.addf %19, %21 : vector<8x128xf32>
      %c0_20 = arith.constant 0 : index
      %c0_21 = arith.constant 0 : index
      %23 = vector.load %arg7[%c0_20, %c0_21] : memref<8x128xf32, #tpu.memory_space<vmem>>, vector<8x128xf32>
      tpu.vector_store %arg7[%c0_20, %c0_21], %22 {strides = array<i32>} : memref<8x128xf32, #tpu.memory_space<vmem>>, vector<8x128xf32>,
    } else {
    }
    return
  }
  func.func @transform_0(%arg0: i32, %arg1: i32) -> (i32, i32) {
    %c0_i32 = arith.constant 0 : i32
    %c0_i32_0 = arith.constant 0 : i32
    return %arg0, %c0_i32 : i32, i32
  }
  func.func @transform_1(%arg0: i32, %arg1: i32) -> (i32, i32) {
    %c0_i32 = arith.constant 0 : i32
    %c0_i32_0 = arith.constant 0 : i32
    return %c0_i32, %arg1 : i32, i32
  }
  func.func @transform_2(%arg0: i32, %arg1: i32) -> (i32, i32) {
    %c0_i32 = arith.constant 0 : i32
    %c0_i32_0 = arith.constant 0 : i32
    return %c0_i32, %arg1 : i32, i32
  }
  func.func @transform_3(%arg0: i32, %arg1: i32) -> (i32, i32) {
    %c0_i32 = arith.constant 0 : i32
    %c0_i32_0 = arith.constant 0 : i32
    return %arg1, %c0_i32 : i32, i32
  }
  func.func @transform_4(%arg0: i32, %arg1: i32) -> (i32, i32) {
    %c0_i32 = arith.constant 0 : i32
    %c0_i32_0 = arith.constant 0 : i32
    %c0_i32_1 = arith.constant 0 : i32
    return %c0_i32, %c0_i32_0 : i32, i32
  }
  func.func @transform_5(%arg0: i32, %arg1: i32) -> (i32, i32) {
    %c0_i32 = arith.constant 0 : i32
    %c0_i32_0 = arith.constant 0 : i32
    return %arg0, %c0_i32 : i32, i32
  }
}

</mosaic_0001>

<bundles_post_ra>
// kernel: tpu_custom_call.1
= control target key start
LH: loop header
LB: loop body
LE: loop exit
PB: predicated region body
PF: predicated region fallthrough
CT: control target
= control target key end

     0   :  { %10 = vsyncpa [#allocation4], 0  ;;  %s1016_s0 = inlined_call_operand.hbm [shape: f32[16,128], index: 0, kind: input, shape index: {}]   ;;  %s1017_s1 = inlined_call_operand.hbm [shape: f32[128,128], index: 1, kind: input, shape index: {}]   ;;  %s1018_s2 = inlined_call_operand.vmem [shape: f32[1,128], index: 2, kind: input, shape index: {}]   ;;  %s1019_s3 = inlined_call_operand.hbm [shape: f32[128,128], index: 3, kind: input, shape index: {}]   ;;  %s1020_s4 = inlined_call_operand.vmem [shape: f32[1,128], index: 4, kind: input, shape index: {}]   ;;  %s1021_s5 = inlined_call_operand.hbm [shape: f32[16,128], index: 5, kind: output, shape index: {}]  }
   0x1   :  { %12 = vsyncpa [#allocation4 + $0x1], 0 }
   0x2   :  { %13 = vsyncpa [#allocation7], 0 }
   0x3   :  { %14 = vsyncpa [#allocation5], 0 }
   0x4   :  { %16 = vsyncpa [#allocation5 + $0x1], 0  ;;  %s859_s18 = smov 0   ;;  %s861_s19 = smov 0  }
   0x5   :  { %s863_s20 = smov 0   ;;  %s865_s21 = smov 0  }
   0x6   :  { %s867_s22 = smov 0   ;;  %s869_s23 = smov 0  }
   0x7 LB: > { %s542_s24 = sadd.s32 4294967295, %s823_s23   ;;  %p544_p0 = scmp.ge.s32.totalorder %s823_s23, 1  ;;  %s823_s23 = sphi %s869_s23, %s22_s23   ;;  %s819_s22 = sphi %s867_s22, %s1031_s22   ;;  %s815_s21 = sphi %s865_s21, %s1030_s21   ;;  %s811_s20 = sphi %s863_s20, %s1029_s20   ;;  %s807_s19 = sphi %s861_s19, %s1028_s19   ;;  %s803_s18 = sphi %s859_s18, %s1027_s18  }
   0x8   : > { %p893_p1 = scmp.eq.s32.totalorder %s542_s24, 0  ;;  %p190_p2 = scmp.lt.s32.totalorder %s823_s23, 3 }
   0x9   : > { %s203_s28 = sshll.u32 %s1017_s1, 4  ;;  %s825_s30 = smov [#allocation6]   ;;  %s204_s28 = int_to_ptr.hbm [resolvable:$true] %s203_s28 }
   0xa   : > { %p901_p3 = pnand %p544_p0, %p190_p2  ;;  %s205_s6 = sshll.u32 %s825_s30, 4  ;;  %s206_s6 = int_to_ptr.vmem [resolvable:$true] %s205_s6 }
   0xb   : > { %p548_p6 = scmp.ge.s32.totalorder %s823_s23, 2  ;;  %s226_s9 = sshll.u32 %s1019_s3, 4  ;;  %s227_s9 = int_to_ptr.hbm [resolvable:$true] %s226_s9 }
   0xc   : > { %p572_p4 = pneg %p901_p3  ;;  %s826_s10 = smov 128  }
   0xd   : > { %s827_s11 = smov 8   ;;  %s828_s12 = smov [#allocation8]  }
   0xe   : > { %p573_p5 = pnand %p572_p4, %p893_p1  ;;  %s228_s13 = sshll.u32 %s828_s12, 4  ;;  %s229_s13 = int_to_ptr.vmem [resolvable:$true] %s228_s13 }
   0xf   : > { %s34_s14 = sadd.s32 1, %s819_s22  ;;  %s543_s15 = sadd.s32 4294967294, %s823_s23  }
  0x10   : > { %575 = dma.hbm_to_vmem [thread:$0]  (!%p573_p5), %s204_s28, 2048, %s206_s6, [#allocation7], %s826_s10, %s826_s10, %s827_s11  }
  0x11   : > { %578 = dma.hbm_to_vmem [thread:$0]  (!%p573_p5), %s227_s9, 2048, %s229_s13, [#allocation7], %s826_s10, %s826_s10, %s827_s11  }
  0x12   : > { %p36_p7 = scmp.ge.s32.totalorder %s34_s14, 2  ;;  %s41_s16 = sadd.s32 1, %s811_s20 }
  0x13   : > { %p48_p8 = scmp.ne.s32.totalorder %s811_s20, %s807_s19  ;;  %p49_p9 = scmp.eq.s32.totalorder %s823_s23, 0 }
  0x14   : > { %s1033_s14 = smov (%p36_p7, %s34_s14), 0  ;;  %p54_p10 = scmp.ne.s32.totalorder %s807_s19, %s803_s18 }
  0x15   : > { %s38_s17 = ssub.s32 %s819_s22, %s1033_s14  ;;  %p177_p11 = scmp.eq.s32.totalorder %s542_s24, 1 }
  0x16   : > { %p39_p12 = scmp.eq.s32.totalorder %s38_s17, 0  ;;  %p929_p13 = por %p893_p1, %p54_p10 }
  0x17   : > { %p933_p0 = por %p177_p11, %p48_p8  ;;  %p183_p2 = scmp.eq.s32.totalorder %s543_s15, 1 }
  0x18   : > { %s938_s28 = scalar_select %p39_p12, %s811_s20, %s41_s16  }
  0x19   : > { %p50_p4 = por %p49_p9, %p48_p8  ;;  %p940_p5 = por %p183_p2, %p54_p10 }
  0x1a   : > { %s245_s6 = sand.u32 1, %s811_s20   ;;  %s550_s24 = sshll.u32 %s819_s22, 3 }
  0x1b   : > { %p589_p7 = scmp.lt.s32.totalorder %s823_s23, 2  ;;  %s549_s7 = sshll.u32 %s245_s6, 3 }
  0x1c   : > { %s253_s10 = scalar_lea.hbm %s1016_s0, %s550_s24  ;;  %s249_s12 = scalar_lea.vmem [#allocation3], %s549_s7 }
  0x1d   : > { %s255_s11 = sshll.u32 %s253_s10, 4  ;;  %s257_s13 = sshll.u32 %s249_s12, 4  ;;  %s256_s11 = int_to_ptr.hbm [resolvable:$true] %s255_s11  ;;  %s258_s13 = int_to_ptr.vmem [resolvable:$true] %s257_s13 }
  0x1e   : > { %p580_p11 = pnand %p589_p7, %p50_p4  ;;  %s246_s15 = scalar_lea.sflag [#allocation4], %s245_s6 }
  0x1f   : > { %266 = sbr.rel (%p901_p3) target bundleno = 332 (0x14c), region = 40  ;;  %s953_s16 = sand.u32 (!%p901_p3), 1, %s807_s19  }
  0x20   : > { %582 = dma.hbm_to_vmem [thread:$0]  (!%p580_p11), %s256_s11, 128, %s258_s13, %s246_s15  }
  0x21   : > { %s552_s17 = sshll.u32 (!%p901_p3), %s953_s16, 3  ;;  %s269_s24 = scalar_lea.sflag (!%p901_p3), [#allocation4], %s953_s16 }
  0x22   : > { %s959_s7 = scalar_lea.vmem (!%p901_p3), [#allocation3], %s552_s17 }
  0x24   : > { %790 = dma.done.wait (%p929_p13), %s269_s24, 128  }
  0x25   : > { %792 = vsyncadd (%p929_p13), %s269_s24, 4294967168 }
  0x26   : > { %794 = dma.done.wait (%p893_p1), [#allocation7], 4096  }
  0x27   : > { %796 = vsyncadd (%p893_p1), [#allocation7], 4294963200  ;;  %v338_v0 = vld [vmem:[#allocation6 + $0x78] sm:$0xff]  ;;  %v337_v1 = vld [vmem:[#allocation6 + $0x70] sm:$0xff]  ;;  %s557_s26 = sshll.u32 %s815_s21, 3  ;;  %s312_s12 = scalar_lea.vmem [#allocation9], %s552_s17 }
  0x28   : > { %343 = vmatpush.msra.mxu0 %v338_v0  ;;  %v336_v2 = vld [vmem:[#allocation6 + $0x68] sm:$0xff]  ;;  %v335_v3 = vld [vmem:[#allocation6 + $0x60] sm:$0xff]  ;;  %v380_v4 = vld [vmem:[#allocation8 + $0x78] sm:$0xff]  ;;  %s424_s9 = scalar_lea.hbm %s1021_s5, %s557_s26  ;;  %s426_s13 = sshll.u32 %s312_s12, 4  ;;  %s427_s13 = int_to_ptr.vmem [resolvable:$true] %s426_s13 }
  0x29   : > { %v334_v5 = vld [vmem:[#allocation6 + $0x58] sm:$0xff]  ;;  %381 = vmatpush.msra.mxu1 %v380_v4  ;;  %v379_v6 = vld [vmem:[#allocation8 + $0x70] sm:$0xff]  ;;  %v378_v7 = vld [vmem:[#allocation8 + $0x68] sm:$0xff]  ;;  %s428_s15 = sshll.u32 %s424_s9, 4  ;;  %s414_s24 = scalar_lea.sflag [#allocation5], %s953_s16  ;;  %s429_s15 = int_to_ptr.hbm [resolvable:$true] %s428_s15 }
  0x2a   : > { %344 = vmatpush.msra.mxu0 %v337_v1  ;;  %v333_v8 = vld [vmem:[#allocation6 + $0x50] sm:$0xff]  ;;  %v377_v9 = vld [vmem:[#allocation8 + $0x60] sm:$0xff]  ;;  %v332_v10 = vld [vmem:[#allocation6 + $0x48] sm:$0xff]  ;;  %s751_s21 = sshra.s32 %s429_s15, 4  ;;  %s757_s26 = scalar_lea.hbm %s1021_s5, 16  ;;  %s752_s21 = int_to_ptr.hbm [resolvable:$true] %s751_s21 }
  0x2b   : > { %382 = vmatpush.msra.mxu1 %v379_v6  ;;  %v376_v11 = vld [vmem:[#allocation8 + $0x58] sm:$0xff]  ;;  %v331_v12 = vld [vmem:[#allocation6 + $0x40] sm:$0xff]  ;;  %v375_v13 = vld [vmem:[#allocation8 + $0x50] sm:$0xff]  ;;  %p758_p9 = scmp.lt.s32.totalorder %s752_s21, %s1021_s5 }
  0x2c   : > { %345 = vmatpush.msra.mxu0 %v336_v2  ;;  %v330_v14 = vld [vmem:[#allocation6 + $0x38] sm:$0xff]  ;;  %v374_v15 = vld [vmem:[#allocation8 + $0x48] sm:$0xff]  ;;  %v329_v16 = vld [vmem:[#allocation6 + $0x30] sm:$0xff] }
  0x2d   : > { %383 = vmatpush.msra.mxu1 %v378_v7  ;;  %v373_v17 = vld [vmem:[#allocation8 + $0x40] sm:$0xff]  ;;  %v328_v18 = vld [vmem:[#allocation6 + $0x28] sm:$0xff]  ;;  %v372_v19 = vld [vmem:[#allocation8 + $0x38] sm:$0xff] }
  0x2e   : > { %346 = vmatpush.msra.mxu0 %v335_v3  ;;  %v327_v20 = vld [vmem:[#allocation6 + $0x20] sm:$0xff]  ;;  %v371_v21 = vld [vmem:[#allocation8 + $0x30] sm:$0xff]  ;;  %v326_v22 = vld [vmem:[#allocation6 + $0x18] sm:$0xff] }
  0x2f   : > { %384 = vmatpush.msra.mxu1 %v377_v9  ;;  %v370_v23 = vld [vmem:[#allocation8 + $0x28] sm:$0xff]  ;;  %v325_v24 = vld [vmem:[#allocation6 + $0x10] sm:$0xff]  ;;  %v369_v25 = vld [vmem:[#allocation8 + $0x20] sm:$0xff] }
  0x30   : > { %347 = vmatpush.msra.mxu0 %v334_v5  ;;  %v324_v26 = vld [vmem:[#allocation6 + $0x8] sm:$0xff]  ;;  %v368_v27 = vld [vmem:[#allocation8 + $0x18] sm:$0xff]  ;;  %v323_v28 = vld [vmem:[#allocation6] sm:$0xff] }
  0x31   : > { %385 = vmatpush.msra.mxu1 %v376_v11  ;;  %v322_v29 = vld [vmem:[%s959_s7] sm:$0xff]  ;;  %v366_v31 = vld [vmem:[#allocation8 + $0x8] sm:$0xff]  ;;  %v365_v32 = vld [vmem:[#allocation8] sm:$0xff]  ;;  %s753_s7 = scalar_lea.hbm %s752_s21, 8 }
  0x32   : > { %348 = vmatpush.msra.mxu0 %v333_v8  ;;  %v367_v30 = vld [vmem:[#allocation8 + $0x10] sm:$0xff]  ;;  %p754_p1 = scmp.ne.s32.totalorder %s752_s21, %s753_s7  ;;  %p759_p10 = scmp.lt.s32.totalorder %s757_s26, %s753_s7 }
  0x33   : > { %386 = vmatpush.msra.mxu1 %v375_v13  ;;  %v645_v33 = vld [vmem:[%s1018_s2] ss:$0 sm:$0xff] }
  0x34   : > { %349 = vmatpush.msra.mxu0 %v332_v10  ;;  %v646_v37 = vld [vmem:[%s1020_s4] ss:$0 sm:$0xff]  ;;  %p755_p3 = pnand %p754_p1, %p933_p0  ;;  %p760_p12 = por %p759_p10, %p758_p9 }
  0x35   : > { %387 = vmatpush.msra.mxu1 %v374_v15 }
  0x36   : > { %350 = vmatpush.msra.mxu0 %v331_v12  ;;  %p756_p8 = pneg %p755_p3 }
  0x37   : > { %388 = vmatpush.msra.mxu1 %v373_v17 }
  0x38   : > { %351 = vmatpush.msra.mxu0 %v330_v14  ;;  %p761_p13 = pnand %p760_p12, %p756_p8 }
  0x39   : > { %389 = vmatpush.msra.mxu1 %v372_v19 }
  0x3a   : > { %352 = vmatpush.msra.mxu0 %v329_v16 }
  0x3b   : > { %390 = vmatpush.msra.mxu1 %v371_v21 }
  0x3c   : > { %353 = vmatpush.msra.mxu0 %v328_v18 }
  0x3d   : > { %391 = vmatpush.msra.mxu1 %v370_v23 }
  0x3e   : > { %354 = vmatpush.msra.mxu0 %v327_v20 }
  0x3f   : > { %392 = vmatpush.msra.mxu1 %v369_v25 }
  0x40   : > { %355 = vmatpush.msra.mxu0 %v326_v22 }
  0x41   : > { %393 = vmatpush.msra.mxu1 %v368_v27 }
  0x42   : > { %356 = vmatpush.msra.mxu0 %v325_v24 }
  0x43   : > { %394 = vmatpush.msra.mxu1 %v367_v30 }
  0x44   : > { %357 = vmatpush.msra.mxu0 %v324_v26 }
  0x45   : > { %395 = vmatpush.msra.mxu1 %v366_v31 }
  0x46   : > { %358 = vmatpush.msra.mxu0 %v323_v28 }
  0x47   : > { %359 = vmatmul.f32.vlgmr.msra.gmra.mxu0 %v322_v29  ;;  %396 = vmatpush.msra.mxu1 %v365_v32 }
  0xc4   : > { %v360_v34 = vpop.f32.mrf.mxu0 }
  0xc5   : > { %v361_v35 = vadd.f32 %v645_v33, %v360_v34 }
  0xc7   : > { %v363_v36 = vmax.f32 %v361_v35, 0.0 }
  0xc9   : > { %397 = vmatmul.f32.vlgmr.msra.gmra.mxu1 %v363_v36 }
 0x146   : > { %v398_v38 = vpop.f32.mrf.mxu1 }
 0x147   : > { %v411_v39 = vadd.f32 %v646_v37, %v398_v38 }
 0x149   : > { %412 = vst [vmem:[%s312_s12] sm:$0xff] %v411_v39 }
 0x14a   : > { %764 = shalt.err (!%p761_p13)
}
 0x14b   : > { %570 = dma.vmem_to_hbm [thread:$0]  (%p933_p0), %s427_s13, 128, %s429_s15, %s414_s24  }
 0x14c PF: > { %s440_s16 = sand.u32 1, %s803_s18   ;;  %p584_p2 = pnand %p548_p6, %p940_p5 }
 0x14d   : > { %s441_s8 = scalar_lea.sflag [#allocation5], %s440_s16 }
 0x14e   : > { %p585_p4 = pneg %p584_p2 }
 0x150   : > { %798 = dma.done.wait (%p585_p4), %s441_s8, 128  }
 0x151   : > { %800 = vsyncadd (%p585_p4), %s441_s8, 4294967168  ;;  %s22_s23 = sadd.s32 1, %s823_s23   ;;  %s1027_s18 = smov %s807_s19 }
 0x152   : > { %p19_p7 = scmp.ge.s32.totalorder %s22_s23, 4   ;;  %s1028_s19 = smov %s811_s20 }
 0x153   : > { %s1029_s20 = smov %s938_s28  ;;  %s1030_s21 = smov %s819_s22 }
 0x154   : > { %s1031_s22 = smov %s1033_s14  ;;  %21 = sbr.rel (!%p19_p7) target bundleno = 7 (0x7), region = 106 }
 0x159   :  { %447 = vsyncpa [#allocation4], 1 }
 0x15a   :  { %449 = vsyncpa [#allocation4 + $0x1], 1 }
 0x15b   :  { %450 = vsyncpa [#allocation7], 1 }
 0x15c   :  { %451 = vsyncpa [#allocation5], 1 }
 0x15d   :  { %453 = vsyncpa [#allocation5 + $0x1], 1 }

</bundles_post_ra>
